<compile_context>
chip_gen: v7x
topology: tpu7x:2x2x1
jax: 0.10.0
libtpu: 0.0.40
codegen_flags: <defaults>
</compile_context>

<pallas_src>
import math

import jax
import jax.numpy as jnp
from jax.experimental import pallas as pl
from jax.experimental.pallas import tpu as pltpu

LANE = 128
SUBLANE = 8


def _round_up(x, m):
    return ((x + m - 1) // m) * m


def _tpu_vmem_capacity_bytes():
    try:
        return int(pltpu.get_tpu_info().vmem_capacity_bytes)
    except Exception:
        return 64 * 1024 * 1024  # conservative fallback (v7x per-TC VMEM)


def _fused_chain_kernel(x_ref, *refs):
    """refs = (w0, b0, w1, b1, ..., o_ref). All feature dims pre-padded to 128."""
    o_ref = refs[-1]
    param_refs = refs[:-1]
    n_layers = len(param_refs) // 2

    # Input tile may arrive as f32 (unpadded fast path) or bf16 (padded path);
    # MXU matmuls always run in bf16 with f32 accumulation.
    h = x_ref[...].astype(jnp.bfloat16)
    for l in range(n_layers):
        w_ref = param_refs[2 * l]       # bf16 [F_in_pad, F_out_pad]
        b_ref = param_refs[2 * l + 1]   # f32  [1, F_out_pad]
        acc = jnp.dot(h, w_ref[...], preferred_element_type=jnp.float32)
        acc = acc + b_ref[...]          # f32 bias add epilogue (VPU-friendly)
        if l < n_layers - 1:
            h = acc.astype(jnp.bfloat16)
        else:
            o_ref[...] = acc.astype(o_ref.dtype)


def _pick_tile_b(b_pad8, max_feat_pad):
    """Batch tile policy (review-fixed):

    * small batches (<= MXU-M target) run as a single grid step -- no
      fragmentation into underfilled 8-row MXU passes, no per-step overhead,
      weights DMA'd exactly once.
    * large batches use tile_b=256 (full 256-row MXU M on v6e/v7x), dropping
      to 128 when hidden widths are wide enough that two live f32
      intermediates per layer would pressure the vreg file / ld-st slots.
    """
    target = 128 if max_feat_pad >= 2048 else 256
    if b_pad8 <= target:
        return b_pad8
    return target


def init_linear_params(key, in_features, out_features):
    """Mirror torch.nn.Linear default init, stored padded + pre-transposed.

    Returns (w_pad [F_in_pad, F_out_pad] bf16, b_pad [1, F_out_pad] f32,
             out_features). Zero padding keeps the math exact: padded input
    columns hit zero weight rows, padded output columns get zero weight+bias.
    """
    kw, kb = jax.random.split(key)
    bound = 1.0 / math.sqrt(in_features)
    w = jax.random.uniform(kw, (in_features, out_features), jnp.float32,
                           minval=-bound, maxval=bound)
    b = jax.random.uniform(kb, (1, out_features), jnp.float32,
                           minval=-bound, maxval=bound)
    f_in_pad = _round_up(in_features, LANE)
    f_out_pad = _round_up(out_features, LANE)
    w_pad = jnp.zeros((f_in_pad, f_out_pad), jnp.float32).at[
        :in_features, :out_features].set(w).astype(jnp.bfloat16)
    b_pad = jnp.zeros((1, f_out_pad), jnp.float32).at[
        :, :out_features].set(b)
    return w_pad, b_pad, out_features


def agentzeka_module_forward(x, layer_params, out_dtype=jnp.float32):
    """AgentZekaModule.forward: fused chain of converted layers in one kernel.

    x            : [B, F0] float32
    layer_params : list of (w_pad, b_pad, out_features) from init_linear_params
    out_dtype    : float32 (default, matches nn.Linear) or bfloat16 to halve
                   the output writeback stream if the consumer tolerates it.
    returns      : [B, F_last] out_dtype
    """
    B, F0 = x.shape
    f0_pad = layer_params[0][0].shape[0]
    f_last = layer_params[-1][2]
    f_last_pad = layer_params[-1][0].shape[1]
    assert f0_pad >= F0
    max_feat_pad = max([f0_pad] + [w.shape[1] for (w, _, _) in layer_params])

    b_pad8 = _round_up(B, SUBLANE)
    tile_b = _pick_tile_b(b_pad8, max_feat_pad)
    b_pad = _round_up(b_pad8, tile_b)
    grid = (b_pad // tile_b,)

    # Input fast path: if no padding is needed, pass x straight through (the
    # kernel casts to bf16) and skip the separate XLA pad/cast pass; only
    # materialize a padded bf16 copy when shapes actually need padding.
    needs_in_pad = (B != b_pad) or (F0 != f0_pad)
    if needs_in_pad:
        x_in = jnp.zeros((b_pad, f0_pad), jnp.bfloat16).at[:B, :F0].set(
            x.astype(jnp.bfloat16))
    else:
        x_in = x
    x_itemsize = jnp.dtype(x_in.dtype).itemsize
    out_itemsize = jnp.dtype(out_dtype).itemsize

    in_specs = [pl.BlockSpec((tile_b, f0_pad), lambda i: (i, 0))]
    operands = [x_in]
    flops = 0
    param_bytes = 0
    prev_f_pad = f0_pad
    for (w, b, _f_out) in layer_params:
        # Constant block index -> DMA'd once; single-buffer them so resident
        # parameters cost param_bytes (not 2x) of VMEM (key on v7x's 64 MiB).
        in_specs.append(pl.BlockSpec(w.shape, lambda i: (0, 0),
                                     pipeline_mode=pl.Buffered(1)))
        in_specs.append(pl.BlockSpec(b.shape, lambda i: (0, 0),
                                     pipeline_mode=pl.Buffered(1)))
        operands += [w, b]
        f_out_pad = w.shape[1]
        flops += 2 * b_pad * prev_f_pad * f_out_pad     # padded work actually run
        param_bytes += w.size * 2 + b.size * 4
        prev_f_pad = f_out_pad

    bytes_accessed = (b_pad * f0_pad * x_itemsize + param_bytes
                      + b_pad * f_last_pad * out_itemsize)

    # Generation-aware VMEM budget: query capacity (128 MiB v5e/v6e, 64 MiB
    # v7x per-TC) and leave headroom for Mosaic internal scratch.
    vmem_cap = _tpu_vmem_capacity_bytes()
    vmem_ceiling = max(32 * 1024 * 1024, vmem_cap - 16 * 1024 * 1024)
    vmem_est = (2 * tile_b * f0_pad * x_itemsize          # double-buffered input tile
                + 2 * tile_b * f_last_pad * out_itemsize  # double-buffered output tile
                + param_bytes                             # single-buffered params
                + 2 * tile_b * max_feat_pad * 4)          # live f32 intermediates
    vmem_limit = int(min(max(2 * vmem_est, 32 * 1024 * 1024), vmem_ceiling))
    # TODO(synk): if param_bytes > ~0.6*vmem_ceiling, switch to an N-tiled /
    # emit_pipeline weight-streaming variant instead of fully-resident weights.

    out_pad = pl.pallas_call(
        _fused_chain_kernel,
        out_shape=jax.ShapeDtypeStruct((b_pad, f_last_pad), out_dtype),
        grid_spec=pltpu.PrefetchScalarGridSpec(
            num_scalar_prefetch=0,
            grid=grid,
            in_specs=in_specs,
            out_specs=pl.BlockSpec((tile_b, f_last_pad), lambda i: (i, 0)),
        ),
        compiler_params=pltpu.CompilerParams(
            dimension_semantics=("parallel",),
            vmem_limit_bytes=vmem_limit,
        ),
        cost_estimate=pl.CostEstimate(
            flops=flops, transcendentals=0, bytes_accessed=bytes_accessed),
    )(*operands)

    # Skip the post-kernel slice copy when no padding was added.
    if (B != b_pad) or (f_last != f_last_pad):
        return out_pad[:B, :f_last]
    return out_pad


def _reference_chain(x, layer_params):
    """Pure-JAX reference mirroring the kernel numerics (bf16 MXU feeds,
    f32 accumulation), using unpadded slices of the stored weights."""
    ref = x.astype(jnp.bfloat16)
    f_in = x.shape[1]
    n_layers = len(layer_params)
    for li, (w, b, f_out) in enumerate(layer_params):
        acc = jnp.dot(ref, w[:f_in, :f_out],
                      preferred_element_type=jnp.float32) + b[:, :f_out]
        ref = acc if li == n_layers - 1 else acc.astype(jnp.bfloat16)
        f_in = f_out
    return ref


if __name__ == "__main__":
    key = jax.random.PRNGKey(0)
    k_x, k_l0, k_l1, k_x2, k_l2, k_l3 = jax.random.split(key, 6)

    # Case 1 (padded path): wrapped model with Linear(32->64), Linear(64->32).
    B, F0, F1, F2 = 16, 32, 64, 32
    x = jax.random.normal(k_x, (B, F0), jnp.float32)
    layer_params = [
        init_linear_params(k_l0, F0, F1),
        init_linear_params(k_l1, F1, F2),
    ]
    out = jax.block_until_ready(agentzeka_module_forward(x, layer_params))
    ref = _reference_chain(x, layer_params)
    assert out.shape == (B, F2)
    assert jnp.allclose(out, ref, atol=1e-4, rtol=1e-4)

    # Case 2 (unpadded fast path, no host-side pad/cast or output slice):
    # Linear(128->128), Linear(128->128) with an aligned batch.
    B2, G0, G1, G2 = 8, 128, 128, 128
    x2 = jax.random.normal(k_x2, (B2, G0), jnp.float32)
    layer_params2 = [
        init_linear_params(k_l2, G0, G1),
        init_linear_params(k_l3, G1, G2),
    ]
    out2 = jax.block_until_ready(agentzeka_module_forward(x2, layer_params2))
    ref2 = _reference_chain(x2, layer_params2)
    assert out2.shape == (B2, G2)
    assert jnp.allclose(out2, ref2, atol=1e-4, rtol=1e-4)

    print("KERNEL_OK")
</pallas_src>

<mosaic_0001>
module attributes {stable_mosaic.version = 11 : i64} {
  func.func @_fused_chain_kernel(%arg0: i32, %arg1: memref<16x128xbf16, #tpu.memory_space<vmem>>, %arg2: memref<128x128xbf16, #tpu.memory_space<vmem>>, %arg3: memref<1x128xf32, #tpu.memory_space<vmem>>, %arg4: memref<128x128xbf16, #tpu.memory_space<vmem>>, %arg5: memref<1x128xf32, #tpu.memory_space<vmem>>, %arg6: memref<16x128xf32, #tpu.memory_space<vmem>>) attributes {dimension_semantics = [#tpu.dimension_semantics<parallel>], iteration_bounds = array<i64: 1>, scalar_prefetch = 0 : i64, scratch_operands = 0 : i64, tpu.core_type = #tpu.core_type<tc>, window_params = [{transform_indices = @transform_0, window_bounds = array<i64: 16, 128>}, {pipeline_mode = #tpu.pipeline_mode<synchronous>, transform_indices = @transform_1, window_bounds = array<i64: 128, 128>}, {pipeline_mode = #tpu.pipeline_mode<synchronous>, transform_indices = @transform_2, window_bounds = array<i64: 1, 128>}, {pipeline_mode = #tpu.pipeline_mode<synchronous>, transform_indices = @transform_3, window_bounds = array<i64: 128, 128>}, {pipeline_mode = #tpu.pipeline_mode<synchronous>, transform_indices = @transform_4, window_bounds = array<i64: 1, 128>}, {transform_indices = @transform_5, window_bounds = array<i64: 16, 128>}]} {
    %c0 = arith.constant 0 : index
    %c0_0 = arith.constant 0 : index
    %0 = vector.load %arg1[%c0, %c0_0] : memref<16x128xbf16, #tpu.memory_space<vmem>>, vector<16x128xbf16>
    %c0_1 = arith.constant 0 : index
    %c0_2 = arith.constant 0 : index
    %1 = vector.load %arg2[%c0_1, %c0_2] : memref<128x128xbf16, #tpu.memory_space<vmem>>, vector<128x128xbf16>
    %cst = arith.constant dense<0.000000e+00> : vector<16x128xf32>
    %2 = tpu.matmul %0, %1, %cst {dimension_numbers = #tpu.dot_dimension_numbers<[1], [0], [0], [1], [0, 0, 1, 1], [], []>} : vector<16x128xbf16>, vector<128x128xbf16>, vector<16x128xf32> -> vector<16x128xf32>
    %c0_3 = arith.constant 0 : index
    %c0_4 = arith.constant 0 : index
    %3 = vector.load %arg3[%c0_3, %c0_4] : memref<1x128xf32, #tpu.memory_space<vmem>>, vector<1x128xf32>
    %4 = vector.broadcast %3 : vector<1x128xf32> to vector<16x128xf32>
    %5 = arith.addf %2, %4 : vector<16x128xf32>
    %6 = arith.truncf %5 : vector<16x128xf32> to vector<16x128xbf16>
    %c0_5 = arith.constant 0 : index
    %c0_6 = arith.constant 0 : index
    %7 = vector.load %arg4[%c0_5, %c0_6] : memref<128x128xbf16, #tpu.memory_space<vmem>>, vector<128x128xbf16>
    %cst_7 = arith.constant dense<0.000000e+00> : vector<16x128xf32>
    %8 = tpu.matmul %6, %7, %cst_7 {dimension_numbers = #tpu.dot_dimension_numbers<[1], [0], [0], [1], [0, 0, 1, 1], [], []>} : vector<16x128xbf16>, vector<128x128xbf16>, vector<16x128xf32> -> vector<16x128xf32>
    %c0_8 = arith.constant 0 : index
    %c0_9 = arith.constant 0 : index
    %9 = vector.load %arg5[%c0_8, %c0_9] : memref<1x128xf32, #tpu.memory_space<vmem>>, vector<1x128xf32>
    %10 = vector.broadcast %9 : vector<1x128xf32> to vector<16x128xf32>
    %11 = arith.addf %8, %10 : vector<16x128xf32>
    %c0_10 = arith.constant 0 : index
    %c0_11 = arith.constant 0 : index
    %12 = vector.load %arg6[%c0_10, %c0_11] : memref<16x128xf32, #tpu.memory_space<vmem>>, vector<16x128xf32>
    tpu.vector_store %arg6[%c0_10, %c0_11], %11 {strides = array<i32>} : memref<16x128xf32, #tpu.memory_space<vmem>>, vector<16x128xf32>,
    return
  }
  func.func @transform_0(%arg0: i32) -> (i32, i32) {
    %c0_i32 = arith.constant 0 : i32
    %c0_i32_0 = arith.constant 0 : i32
    return %arg0, %c0_i32 : i32, i32
  }
  func.func @transform_1(%arg0: i32) -> (i32, i32) {
    %c0_i32 = arith.constant 0 : i32
    %c0_i32_0 = arith.constant 0 : i32
    %c0_i32_1 = arith.constant 0 : i32
    return %c0_i32, %c0_i32_0 : i32, i32
  }
  func.func @transform_2(%arg0: i32) -> (i32, i32) {
    %c0_i32 = arith.constant 0 : i32
    %c0_i32_0 = arith.constant 0 : i32
    %c0_i32_1 = arith.constant 0 : i32
    return %c0_i32, %c0_i32_0 : i32, i32
  }
  func.func @transform_3(%arg0: i32) -> (i32, i32) {
    %c0_i32 = arith.constant 0 : i32
    %c0_i32_0 = arith.constant 0 : i32
    %c0_i32_1 = arith.constant 0 : i32
    return %c0_i32, %c0_i32_0 : i32, i32
  }
  func.func @transform_4(%arg0: i32) -> (i32, i32) {
    %c0_i32 = arith.constant 0 : i32
    %c0_i32_0 = arith.constant 0 : i32
    %c0_i32_1 = arith.constant 0 : i32
    return %c0_i32, %c0_i32_0 : i32, i32
  }
  func.func @transform_5(%arg0: i32) -> (i32, i32) {
    %c0_i32 = arith.constant 0 : i32
    %c0_i32_0 = arith.constant 0 : i32
    return %arg0, %c0_i32 : i32, i32
  }
}

</mosaic_0001>

<bundles_post_ra>
// kernel: tpu_custom_call.1
= control target key start
LH: loop header
LB: loop body
LE: loop exit
PB: predicated region body
PF: predicated region fallthrough
CT: control target
= control target key end

     0   :  { %10 = vsyncpa [#allocation3], 0  ;;  %s624_s0 = inlined_call_operand.hbm [shape: bf16[16,128], index: 0, kind: input, shape index: {}]   ;;  %s625_s1 = inlined_call_operand.hbm [shape: bf16[128,128], index: 1, kind: input, shape index: {}]   ;;  %s626_s2 = inlined_call_operand.vmem [shape: f32[1,128], index: 2, kind: input, shape index: {}]   ;;  %s627_s3 = inlined_call_operand.hbm [shape: bf16[128,128], index: 3, kind: input, shape index: {}]   ;;  %s628_s4 = inlined_call_operand.vmem [shape: f32[1,128], index: 4, kind: input, shape index: {}]   ;;  %s629_s5 = inlined_call_operand.hbm [shape: f32[16,128], index: 5, kind: output, shape index: {}]  }
   0x1   :  { %11 = vsyncpa [#allocation6], 0 }
   0x2   :  { %12 = vsyncpa [#allocation4], 0  ;;  %s514_s18 = smov [#allocation5]   ;;  %s515_s20 = smov [#allocation2]  }
   0x3   :  { %s30_s19 = sshll.u32 %s514_s18, 4  ;;  %s18_s21 = sshll.u32 %s515_s20, 4  ;;  %s31_s19 = int_to_ptr.vmem [resolvable:$true] %s30_s19  ;;  %s554_s21 = int_to_ptr.vmem [resolvable:$true] %s18_s21 }
   0x4   :  { %s420_s24 = scalar_lea.hbm %s625_s1, 1024 }
   0x5   :  { %p421_p0 = scmp.ne.s32.totalorder %s625_s1, %s420_s24  ;;  %p424_p1 = scmp.lt.u32.totalorder %s420_s24, %s625_s1 }
   0x7   :  { %p426_p2 = pnand %p424_p1, %p421_p0 }
   0x9   :  { %429 = shalt.err (!%p426_p2)
}
   0xa   :  { %s430_s29 = scalar_lea.vmem %s31_s19, 1024  ;;  %p435_p4 = scmp.lt.s32.totalorder %s31_s19, %s31_s19 }
   0xb   :  { %p431_p3 = scmp.ne.s32.totalorder %s31_s19, %s430_s29  ;;  %p436_p5 = scmp.lt.s32.totalorder %s430_s29, %s430_s29 }
   0xd   :  { %p437_p6 = por %p436_p5, %p435_p4 }
   0xf   :  { %p438_p7 = pnand %p437_p6, %p431_p3 }
  0x11   :  { %441 = shalt.err (!%p438_p7)
}
  0x12   :  { %s516_s30 = smov 64   ;;  %s517_s6 = smov 4  }
  0x13   :  { %36 = dma.hbm_to_vmem [thread:$0]  %s625_s1, 1024, %s31_s19, [#allocation6], %s516_s30, %s516_s30, %s517_s6  }
  0x14   :  { %s442_s11 = scalar_lea.hbm %s624_s0, 128 }
  0x15   :  { %p443_p8 = scmp.ne.s32.totalorder %s624_s0, %s442_s11  ;;  %p446_p9 = scmp.lt.u32.totalorder %s442_s11, %s624_s0 }
  0x17   :  { %p448_p10 = pnand %p446_p9, %p443_p8 }
  0x19   :  { %451 = shalt.err (!%p448_p10)
}
  0x1a   :  { %s452_s16 = scalar_lea.vmem %s554_s21, 128  ;;  %p457_p12 = scmp.lt.s32.totalorder %s554_s21, %s554_s21 }
  0x1b   :  { %p453_p11 = scmp.ne.s32.totalorder %s554_s21, %s452_s16  ;;  %p458_p13 = scmp.lt.s32.totalorder %s452_s16, %s452_s16 }
  0x1d   :  { %p459_p0 = por %p458_p13, %p457_p12 }
  0x1f   :  { %p460_p1 = pnand %p459_p0, %p453_p11 }
  0x21   :  { %463 = shalt.err (!%p460_p1)
}
  0x22   :  { %24 = dma.hbm_to_vmem [thread:$0]  %s624_s0, 128, %s554_s21, [#allocation3], %s516_s30, %s516_s30, %s517_s6  }
  0x23   :  { %s518_s18 = smov [#allocation7]   ;;  %s464_s23 = scalar_lea.hbm %s627_s3, 1024 }
  0x24   :  { %s44_s19 = sshll.u32 %s518_s18, 4  ;;  %p465_p2 = scmp.ne.s32.totalorder %s627_s3, %s464_s23  ;;  %s45_s19 = int_to_ptr.vmem [resolvable:$true] %s44_s19 }
  0x25   :  { %p468_p3 = scmp.lt.u32.totalorder %s464_s23, %s627_s3 }
  0x27   :  { %p470_p4 = pnand %p468_p3, %p465_p2 }
  0x29   :  { %473 = shalt.err (!%p470_p4)
}
  0x2a   :  { %s474_s28 = scalar_lea.vmem %s45_s19, 1024  ;;  %p479_p6 = scmp.lt.s32.totalorder %s45_s19, %s45_s19 }
  0x2b   :  { %p475_p5 = scmp.ne.s32.totalorder %s45_s19, %s474_s28  ;;  %p480_p7 = scmp.lt.s32.totalorder %s474_s28, %s474_s28 }
  0x2d   :  { %p481_p8 = por %p480_p7, %p479_p6 }
  0x2f   :  { %p482_p9 = pnand %p481_p8, %p475_p5 }
  0x31   :  { %485 = shalt.err (!%p482_p9)
}
  0x32   :  { %50 = dma.hbm_to_vmem [thread:$0]  %s627_s3, 1024, %s45_s19, [#allocation6], %s516_s30, %s516_s30, %s517_s6  }
  0x33   :  { %508 = dma.done.wait [#allocation3], 128  }
  0x34   :  { %509 = vsyncadd [#allocation3], 4294967168 }
  0x35   :  { %510 = dma.done.wait [#allocation6], 2048  }
  0x36   :  { %511 = vsyncadd [#allocation6], 4294965248  ;;  %v519_v0 = vmov 0.0   ;;  %vm520_vm0 = vmmov 0   ;;  %v403_v1 = vld [vmem:[#allocation5] sm:$0xff]   ;;  %v404_v2 = vld [vmem:[#allocation5 + $0x8] sm:$0xff]  }
  0x37   :  { %353 = vmatprep.subr.bf16.mxu0 %v519_v0  ;;  %369 = vmatprep.mubr.msk.bf16.mxu0 %vm520_vm0, %v519_v0  ;;  %v405_v3 = vld [vmem:[#allocation5 + $0x10] sm:$0xff]   ;;  %v412_v4 = vld [vmem:[#allocation7] sm:$0xff]   ;;  %v406_v5 = vld [vmem:[#allocation5 + $0x18] sm:$0xff]   ;;  %s521_s7 = smov [#allocation8]  }
  0x38   :  { %373 = vmatprep.subr.bf16.mxu1 %v519_v0  ;;  %389 = vmatprep.mubr.msk.bf16.mxu1 %vm520_vm0, %v519_v0  ;;  %v413_v6 = vld [vmem:[#allocation7 + $0x8] sm:$0xff]   ;;  %v407_v7 = vld [vmem:[#allocation5 + $0x20] sm:$0xff]   ;;  %v414_v8 = vld [vmem:[#allocation7 + $0x10] sm:$0xff]   ;;  %s303_s8 = sshll.u32 %s521_s7, 4  ;;  %s304_s8 = int_to_ptr.vmem [resolvable:$true] %s303_s8 }
  0x39   :  { %354 = vmatpush3.bf16.msra.mxu0 %v403_v1  ;;  %374 = vmatpush3.bf16.msra.mxu1 %v412_v4  ;;  %v408_v9 = vld [vmem:[#allocation5 + $0x28] sm:$0xff]   ;;  %v415_v10 = vld [vmem:[#allocation7 + $0x18] sm:$0xff]   ;;  %v409_v11 = vld [vmem:[#allocation5 + $0x30] sm:$0xff]   ;;  %p491_p11 = scmp.lt.s32.totalorder %s304_s8, %s304_s8 }
  0x3a   :  { %355 = vmatprep.subr.bf16.mxu0 %v519_v0  ;;  %375 = vmatprep.subr.bf16.mxu1 %v519_v0  ;;  %v416_v12 = vld [vmem:[#allocation7 + $0x20] sm:$0xff]   ;;  %v410_v13 = vld [vmem:[#allocation5 + $0x38] sm:$0xff]   ;;  %v417_v14 = vld [vmem:[#allocation7 + $0x28] sm:$0xff]  }
  0x3b   :  { %v411_v15 = vld [vmem:[#allocation2] sm:$0xff]   ;;  %v418_v16 = vld [vmem:[#allocation7 + $0x30] sm:$0xff]  }
  0x3c   :  { %v419_v17 = vld [vmem:[#allocation7 + $0x38] sm:$0xff]  }
  0x3d   :  { %356 = vmatpush3.bf16.msra.mxu0 %v404_v2  ;;  %376 = vmatpush3.bf16.msra.mxu1 %v413_v6  ;;  %v316_v18 = vld [vmem:[%s626_s2] ss:$0 sm:$0xff]  ;;  %s486_s2 = scalar_lea.vmem %s304_s8, 256 }
  0x3e   :  { %357 = vmatprep.subr.bf16.mxu0 %v519_v0  ;;  %377 = vmatprep.subr.bf16.mxu1 %v519_v0  ;;  %v326_v26 = vld [vmem:[%s628_s4] ss:$0 sm:$0xff]  ;;  %p487_p10 = scmp.ne.s32.totalorder %s304_s8, %s486_s2  ;;  %p492_p12 = scmp.lt.s32.totalorder %s486_s2, %s486_s2 }
  0x40   :  { %p493_p13 = por %p492_p12, %p491_p11 }
  0x41   :  { %358 = vmatpush3.bf16.msra.mxu0 %v405_v3  ;;  %378 = vmatpush3.bf16.msra.mxu1 %v414_v8 }
  0x42   :  { %359 = vmatprep.subr.bf16.mxu0 %v519_v0  ;;  %379 = vmatprep.subr.bf16.mxu1 %v519_v0  ;;  %p494_p0 = pnand %p493_p13, %p487_p10 }
  0x45   :  { %360 = vmatpush3.bf16.msra.mxu0 %v406_v5  ;;  %380 = vmatpush3.bf16.msra.mxu1 %v415_v10 }
  0x46   :  { %361 = vmatprep.subr.bf16.mxu0 %v519_v0  ;;  %381 = vmatprep.subr.bf16.mxu1 %v519_v0 }
  0x49   :  { %362 = vmatpush3.bf16.msra.mxu0 %v407_v7  ;;  %382 = vmatpush3.bf16.msra.mxu1 %v416_v12 }
  0x4a   :  { %363 = vmatprep.subr.bf16.mxu0 %v519_v0  ;;  %383 = vmatprep.subr.bf16.mxu1 %v519_v0 }
  0x4d   :  { %364 = vmatpush3.bf16.msra.mxu0 %v408_v9  ;;  %384 = vmatpush3.bf16.msra.mxu1 %v417_v14 }
  0x4e   :  { %365 = vmatprep.subr.bf16.mxu0 %v519_v0  ;;  %385 = vmatprep.subr.bf16.mxu1 %v519_v0 }
  0x51   :  { %366 = vmatpush3.bf16.msra.mxu0 %v409_v11  ;;  %386 = vmatpush3.bf16.msra.mxu1 %v418_v16 }
  0x52   :  { %367 = vmatprep.subr.bf16.mxu0 %v519_v0  ;;  %387 = vmatprep.subr.bf16.mxu1 %v519_v0 }
  0x55   :  { %368 = vmatpush3.bf16.msra.mxu0 %v410_v13  ;;  %388 = vmatpush3.bf16.msra.mxu1 %v419_v17 }
  0x58   :  { %370 = vmatmul.mubr.bf16.vlgmr.msra.gmra.mrb[0].mxu0 %v411_v15 }
 0x12b   :  { %v176_v19 = vpop.f32.mrb[0].mxu0 }
 0x12c   :  { %v371_v20 = vpop.f32.mrb[1].mxu0  ;;  %v177_v22 = vadd.f32 %v316_v18, %v176_v19 }
 0x12d   :  { %v179_v21 = vpop.f32.mrb[2].mxu0 }
 0x12e   :  { %v180_v23 = vadd.f32 %v316_v18, %v179_v21  ;;  %v372_v24 = vpop.f32.mrb[3].mxu0 }
 0x130   :  { %v183_v25 = vpack.c.bf16 %v180_v23, %v177_v22 }
 0x132   :  { %390 = vmatmul.mubr.bf16.vlgmr.msra.gmra.mrb[0].mxu1 %v183_v25 }
 0x205   :  { %v289_v27 = vpop.f32.mrb[0].mxu1 }
 0x206   :  { %v290_v28 = vadd.f32 %v326_v26, %v289_v27  ;;  %v391_v29 = vpop.f32.mrb[1].mxu1 }
 0x207   :  { %v292_v30 = vpop.f32.mrb[2].mxu1 }
 0x208   :  { %296 = vst [vmem:[#allocation8] sm:$0xff] %v290_v28  ;;  %v293_v31 = vadd.f32 %v326_v26, %v292_v30  ;;  %v392_v32 = vpop.f32.mrb[3].mxu1 }
 0x20a   :  { %297 = vst [vmem:[#allocation8 + $0x8] sm:$0xff] %v293_v31 }
 0x20b   :  { %497 = shalt.err (!%p494_p0)
}
 0x20c   :  { %s498_s10 = scalar_lea.hbm %s629_s5, 256 }
 0x20d   :  { %p499_p1 = scmp.ne.s32.totalorder %s629_s5, %s498_s10  ;;  %p502_p2 = scmp.lt.u32.totalorder %s498_s10, %s629_s5 }
 0x20f   :  { %p504_p3 = pnand %p502_p2, %p499_p1 }
 0x211   :  { %507 = shalt.err (!%p504_p3)
}
 0x212   :  { %s522_s15 = smov 128   ;;  %s523_s16 = smov 8  }
 0x213   :  { %309 = dma.vmem_to_hbm [thread:$0]  %s304_s8, 256, %s629_s5, [#allocation4], %s522_s15, %s522_s15, %s523_s16  }
 0x214   :  { %512 = dma.done.wait [#allocation4], 256  }
 0x215   :  { %513 = vsyncadd [#allocation4], 4294967040 }
 0x216   :  { %313 = vsyncpa [#allocation3], 1 }
 0x217   :  { %314 = vsyncpa [#allocation6], 1 }
 0x218   :  { %315 = vsyncpa [#allocation4], 1 }

</bundles_post_ra>
